<compile_context>
chip_gen: v7x
topology: tpu7x:2x2x1
jax: 0.10.0
libtpu: 0.0.40
codegen_flags: <defaults>
</compile_context>

<pallas_src>
import functools
import math

import jax
import jax.numpy as jnp
from jax import lax
from jax.experimental import pallas as pl
from jax.experimental.pallas import tpu as pltpu

_HALF_LOG_2PI = 0.5 * math.log(2.0 * math.pi)
_INV_SQRT2 = 1.0 / math.sqrt(2.0)


def _round_up(x, m):
    return ((x + m - 1) // m) * m


def _lognormal_mixture_kernel(hist_ref, times_ref, w1_ref, b1_ref, w2_ref, b2_ref,
                              params_ref, rows_ref, *, components):
    """Transposed layout: rows live on lanes, components on sublanes.

    hist_ref : (H, br)  bf16     times_ref : (1, br) f32
    w1_ref   : (H, H)   bf16     b1_ref    : (H, 1)  f32
    w2_ref   : (3C, H)  bf16     b2_ref    : (3C, 1) f32
    params_ref : (3C, br) f32  -> [logw ; mu ; sigma] stacked on sublanes
    rows_ref   : (3, br)  f32  -> [log_prob ; log_survival ; preds]
    """
    C = components

    t = times_ref[...] + 1e-12                                # (1, br)
    logt = jnp.log(t)                                          # (1, br)

    # --- decoder MLP: Linear(H,H) -> Tanh -> fused Linear(H, 3C), bf16 MXU, f32 acc ---
    hidden = jnp.tanh(
        jnp.dot(w1_ref[...], hist_ref[...], preferred_element_type=jnp.float32)
        + b1_ref[...])                                          # (H, br) f32
    raw = jnp.dot(w2_ref[...], hidden.astype(w2_ref.dtype),
                  preferred_element_type=jnp.float32) + b2_ref[...]   # (3C, br) f32

    wl = raw[0:C, :]            # weight logits     (C, br)
    mu = raw[C:2 * C, :]        # log-normal loc    (C, br)
    sl = raw[2 * C:3 * C, :]    # sigma logits      (C, br)

    # softplus (numerically stable)
    sigma = jnp.maximum(sl, 0.0) + jnp.log1p(jnp.exp(-jnp.abs(sl)))   # (C, br)
    log_sigma = jnp.log(sigma)

    # log_softmax over components, reusing the exponentials for the probabilities
    m = jnp.max(wl, axis=0, keepdims=True)                     # (1, br)
    u = jnp.exp(wl - m)                                         # (C, br)
    denom = jnp.sum(u, axis=0, keepdims=True)                   # (1, br)
    logw = wl - m - jnp.log(denom)                              # (C, br)
    w = u / denom                                               # (C, br) softmax probs

    z = (logt - mu) / sigma                                     # (C, br)

    # log_probs = logsumexp_c( logw + LogNormal(mu,sigma).log_prob(t) )
    comp_lp = logw - logt - log_sigma - _HALF_LOG_2PI - 0.5 * z * z
    mlp = jnp.max(comp_lp, axis=0, keepdims=True)
    log_probs = mlp + jnp.log(jnp.sum(jnp.exp(comp_lp - mlp), axis=0, keepdims=True))

    # log survival = log( sum_c w_c * (1 - clamp(cdf_c, 1e-7, 1-1e-7)) )
    cdf = 0.5 * (1.0 + lax.erf(z * _INV_SQRT2))
    cdf = jnp.clip(cdf, 1e-07, 1.0 - 1e-07)
    log_surv = jnp.log(jnp.sum(w * (1.0 - cdf), axis=0, keepdims=True))

    # preds = exp(logsumexp(logw + mu + sigma^2/2)) - 1e-12 == sum_c w_c*exp(mu+sigma^2/2) - 1e-12
    preds = jnp.sum(w * jnp.exp(mu + 0.5 * sigma * sigma), axis=0, keepdims=True) - 1e-12

    # lane-dense (full >=128-lane) stores; sublane-sliced within the block
    params_ref[0:C, :] = logw
    params_ref[C:2 * C, :] = mu
    params_ref[2 * C:3 * C, :] = sigma
    rows_ref[0:1, :] = log_probs
    rows_ref[1:2, :] = log_surv
    rows_ref[2:3, :] = preds


def log_normal_mixture_forward(histories, times, masks, params, *, block_cols=4096):
    """Pallas-backed equivalent of LogNormalMixture.forward (vi_method=None)."""
    f32 = jnp.float32
    bf16 = jnp.bfloat16

    if times.ndim <= 2:
        times = times[..., None]
    if masks.ndim <= 2:
        masks = masks[..., None]
    times = times.astype(f32)
    masks = masks.astype(f32)

    B, S, H = histories.shape
    C = params['w2'].shape[1] // 3
    N = B * S

    # rows -> lanes: transpose activations (layout plumbing in the wrapper, not compute)
    hist_t = histories.astype(bf16).reshape(N, H).T            # (H, N) bf16
    times_t = times.reshape(1, N)                               # (1, N) f32

    # lane-block size: multiple of 128, large enough to amortize per-grid-step overhead,
    # >= 2 blocks when possible so v7x can shard the "parallel" axis across both TCs.
    n128 = _round_up(max(N, 1), 128)
    br = min(block_cols, n128)
    br = max(128, (br // 128) * 128)
    if n128 // br < 2 and n128 >= 256:
        br = max(128, ((n128 // 2) // 128) * 128)
    n_pad = _round_up(N, br)
    pad = n_pad - N
    if pad:
        hist_t = jnp.pad(hist_t, ((0, 0), (0, pad)))
        times_t = jnp.pad(times_t, ((0, 0), (0, pad)), constant_values=1.0)

    # single-copy transposed weights (no per-batch replication); fused 3C head; bf16 for MXU
    w1_t = params['w1'].astype(bf16).T                          # (H, H)  = w1.T
    b1_c = params['b1'].astype(f32).reshape(H, 1)               # (H, 1)
    w2_t = params['w2'].astype(bf16).T                          # (3C, H) = w2.T
    b2_c = params['b2'].astype(f32).reshape(3 * C, 1)           # (3C, 1)

    grid = (n_pad // br,)
    kernel = functools.partial(_lognormal_mixture_kernel, components=C)

    # explicit scoped-VMEM budget (v5e default is only 16 MiB; v7x physical VMEM is 64 MiB)
    vmem_est = (
        2 * H * br * 2                    # hist block, bf16, double-buffered
        + 2 * br * 4 * 2                  # times block
        + 2 * (H * H + 3 * C * H) * 2     # w1_T / w2_T (default double-buffered)
        + 2 * (H + 3 * C) * 4             # biases
        + 2 * 3 * C * br * 4              # params output block
        + 2 * 3 * br * 4                  # rows output block
        + 4 * H * br * 4                  # f32 in-kernel intermediates headroom
    )
    vmem_limit = int(min(56 * 1024 * 1024, max(16 * 1024 * 1024, 2 * vmem_est)))

    params_slab, rows_slab = pl.pallas_call(
        kernel,
        out_shape=(jax.ShapeDtypeStruct((3 * C, n_pad), f32),
                   jax.ShapeDtypeStruct((3, n_pad), f32)),
        grid_spec=pltpu.PrefetchScalarGridSpec(
            num_scalar_prefetch=0,
            grid=grid,
            in_specs=[
                pl.BlockSpec((H, br), lambda i: (0, i)),        # histories (transposed)
                pl.BlockSpec((1, br), lambda i: (0, i)),        # times (transposed)
                pl.BlockSpec((H, H), lambda i: (0, 0)),         # w1_T (constant block)
                pl.BlockSpec((H, 1), lambda i: (0, 0)),         # b1
                pl.BlockSpec((3 * C, H), lambda i: (0, 0)),     # w2_T (fused heads)
                pl.BlockSpec((3 * C, 1), lambda i: (0, 0)),     # b2
            ],
            out_specs=[
                pl.BlockSpec((3 * C, br), lambda i: (0, i)),    # [logw ; mu ; sigma]
                pl.BlockSpec((3, br), lambda i: (0, i)),        # [log_prob ; log_surv ; preds]
            ],
        ),
        compiler_params=pltpu.CompilerParams(
            dimension_semantics=("parallel",),    # shard lane-blocks across v7x's two TCs
            vmem_limit_bytes=vmem_limit),
    )(hist_t, times_t, w1_t, b1_c, w2_t, b2_c)

    # unpack / strip padding (wrapper-side layout plumbing back to (B, S, ...))
    logw_t = params_slab[0:C, :N]
    mu_t = params_slab[C:2 * C, :N]
    sigma_t = params_slab[2 * C:3 * C, :N]
    log_weights = logw_t.T.reshape(B, S, C)
    mu = mu_t.T.reshape(B, S, C)
    sigma = sigma_t.T.reshape(B, S, C)

    log_probs2d = rows_slab[0, :N].reshape(B, S)
    log_surv_all = rows_slab[1, :N].reshape(B, S)
    preds = rows_slab[2, :N].reshape(B, S, 1)

    # last-event handling (exact integer indexing, tiny (B, S) work outside the kernel)
    masks2d = masks[..., 0]                                         # (B, S)
    last_idx = jnp.sum(masks2d, axis=-1).astype(jnp.int32) - 1      # (B,)
    valid = last_idx >= 0
    safe_idx = jnp.maximum(last_idx, 0)
    is_last = (jnp.arange(S, dtype=jnp.int32)[None, :] == last_idx[:, None])
    masks_wo_last = masks2d * (1.0 - is_last.astype(f32))
    event_ll = jnp.sum(log_probs2d * masks_wo_last, axis=-1)                         # (B,)
    surv_ll = jnp.take_along_axis(log_surv_all, safe_idx[:, None], axis=-1)[:, 0]    # (B,)
    surv_ll = jnp.where(valid, surv_ll, 0.0)   # guard sequences with zero unmasked events

    return {
        'event_ll': event_ll,        # (B,)
        'surv_ll': surv_ll,          # (B,)
        'preds': preds,              # (B, S, 1)
        'log_weights': log_weights,  # (B, S, C)
        'mu': mu,                    # (B, S, C)  (lognorm_dist loc)
        'sigma': sigma,              # (B, S, C)  (lognorm_dist scale)
    }
    # TODO(synk): vi_method is not None path (extra z-sample axis + averaging) not implemented.


if __name__ == "__main__":
    B, S, H, C = 2, 8, 32, 4

    key = jax.random.PRNGKey(0)
    k1, k2, k3, k4, k5, k6 = jax.random.split(key, 6)

    histories = jax.random.normal(k1, (B, S, H), jnp.float32)
    times = jax.random.uniform(k2, (B, S), jnp.float32, minval=0.1, maxval=2.0)
    # masks: first `len` positions of each sequence are real events
    lens = jnp.array([6, 8], dtype=jnp.int32)
    masks = (jnp.arange(S)[None, :] < lens[:, None]).astype(jnp.float32)

    # deterministic parameter init (PyTorch nn.Linear-style uniform bounds)
    bound = 1.0 / math.sqrt(H)
    params = {
        'w1': jax.random.uniform(k3, (H, H), jnp.float32, -bound, bound),
        'b1': jax.random.uniform(k4, (H,), jnp.float32, -bound, bound),
        'w2': jax.random.uniform(k5, (H, 3 * C), jnp.float32, -bound, bound),
        'b2': jax.random.uniform(k6, (3 * C,), jnp.float32, -bound, bound),
    }

    out = log_normal_mixture_forward(histories, times, masks, params)
    jax.block_until_ready(out)
    print("KERNEL_OK")
</pallas_src>

<mosaic_0001>
module attributes {stable_mosaic.version = 11 : i64} {
  func.func @_lognormal_mixture_kernel(%arg0: i32, %arg1: memref<32x128xbf16, #tpu.memory_space<vmem>>, %arg2: memref<1x128xf32, #tpu.memory_space<vmem>>, %arg3: memref<32x32xbf16, #tpu.memory_space<vmem>>, %arg4: memref<32x1xf32, #tpu.memory_space<vmem>>, %arg5: memref<12x32xbf16, #tpu.memory_space<vmem>>, %arg6: memref<12x1xf32, #tpu.memory_space<vmem>>, %arg7: memref<12x128xf32, #tpu.memory_space<vmem>>, %arg8: memref<3x128xf32, #tpu.memory_space<vmem>>) attributes {dimension_semantics = [#tpu.dimension_semantics<parallel>], iteration_bounds = array<i64: 1>, scalar_prefetch = 0 : i64, scratch_operands = 0 : i64, tpu.core_type = #tpu.core_type<tc>, window_params = [{transform_indices = @transform_0, window_bounds = array<i64: 32, 128>}, {transform_indices = @transform_1, window_bounds = array<i64: 1, 128>}, {pipeline_mode = #tpu.pipeline_mode<synchronous>, transform_indices = @transform_2, window_bounds = array<i64: 32, 32>}, {pipeline_mode = #tpu.pipeline_mode<synchronous>, transform_indices = @transform_3, window_bounds = array<i64: 32, 1>}, {pipeline_mode = #tpu.pipeline_mode<synchronous>, transform_indices = @transform_4, window_bounds = array<i64: 12, 32>}, {pipeline_mode = #tpu.pipeline_mode<synchronous>, transform_indices = @transform_5, window_bounds = array<i64: 12, 1>}, {transform_indices = @transform_6, window_bounds = array<i64: 12, 128>}, {transform_indices = @transform_7, window_bounds = array<i64: 3, 128>}]} {
    %c0 = arith.constant 0 : index
    %c0_0 = arith.constant 0 : index
    %0 = vector.load %arg2[%c0, %c0_0] : memref<1x128xf32, #tpu.memory_space<vmem>>, vector<1x128xf32>
    %cst = arith.constant 9.99999996E-13 : f32
    %1 = vector.broadcast %cst : f32 to vector<1x128xf32>
    %2 = arith.addf %0, %1 : vector<1x128xf32>
    %3 = math.log %2 : vector<1x128xf32>
    %c0_1 = arith.constant 0 : index
    %c0_2 = arith.constant 0 : index
    %4 = vector.load %arg3[%c0_1, %c0_2] : memref<32x32xbf16, #tpu.memory_space<vmem>>, vector<32x32xbf16>
    %c0_3 = arith.constant 0 : index
    %c0_4 = arith.constant 0 : index
    %5 = vector.load %arg1[%c0_3, %c0_4] : memref<32x128xbf16, #tpu.memory_space<vmem>>, vector<32x128xbf16>
    %cst_5 = arith.constant dense<0.000000e+00> : vector<32x128xf32>
    %6 = tpu.matmul %4, %5, %cst_5 {dimension_numbers = #tpu.dot_dimension_numbers<[1], [0], [0], [1], [0, 0, 1, 1], [], []>} : vector<32x32xbf16>, vector<32x128xbf16>, vector<32x128xf32> -> vector<32x128xf32>
    %c0_6 = arith.constant 0 : index
    %c0_7 = arith.constant 0 : index
    %7 = vector.load %arg4[%c0_6, %c0_7] : memref<32x1xf32, #tpu.memory_space<vmem>>, vector<32x1xf32>
    %8 = vector.broadcast %7 : vector<32x1xf32> to vector<32x128xf32>
    %9 = arith.addf %6, %8 : vector<32x128xf32>
    %10 = math.tanh %9 : vector<32x128xf32>
    %c0_8 = arith.constant 0 : index
    %c0_9 = arith.constant 0 : index
    %11 = vector.load %arg5[%c0_8, %c0_9] : memref<12x32xbf16, #tpu.memory_space<vmem>>, vector<12x32xbf16>
    %12 = arith.truncf %10 : vector<32x128xf32> to vector<32x128xbf16>
    %cst_10 = arith.constant dense<0.000000e+00> : vector<12x128xf32>
    %13 = tpu.matmul %11, %12, %cst_10 {dimension_numbers = #tpu.dot_dimension_numbers<[1], [0], [0], [1], [0, 0, 1, 1], [], []>} : vector<12x32xbf16>, vector<32x128xbf16>, vector<12x128xf32> -> vector<12x128xf32>
    %c0_11 = arith.constant 0 : index
    %c0_12 = arith.constant 0 : index
    %14 = vector.load %arg6[%c0_11, %c0_12] : memref<12x1xf32, #tpu.memory_space<vmem>>, vector<12x1xf32>
    %15 = vector.broadcast %14 : vector<12x1xf32> to vector<12x128xf32>
    %16 = arith.addf %13, %15 : vector<12x128xf32>
    %17 = vector.extract_strided_slice %16 {offsets = [0, 0], sizes = [4, 128], strides = [1, 1]} : vector<12x128xf32> to vector<4x128xf32>
    %18 = vector.extract_strided_slice %16 {offsets = [4, 0], sizes = [4, 128], strides = [1, 1]} : vector<12x128xf32> to vector<4x128xf32>
    %19 = vector.extract_strided_slice %16 {offsets = [8, 0], sizes = [4, 128], strides = [1, 1]} : vector<12x128xf32> to vector<4x128xf32>
    %cst_13 = arith.constant 0.000000e+00 : f32
    %20 = vector.broadcast %cst_13 : f32 to vector<4x128xf32>
    %21 = arith.maximumf %19, %20 : vector<4x128xf32>
    %22 = math.absf %19 : vector<4x128xf32>
    %cst_14 = arith.constant 0.000000e+00 : f32
    %23 = vector.broadcast %cst_14 : f32 to vector<4x128xf32>
    %24 = arith.subf %23, %22 : vector<4x128xf32>
    %25 = math.exp %24 : vector<4x128xf32>
    %26 = math.log1p %25 : vector<4x128xf32>
    %27 = arith.addf %21, %26 : vector<4x128xf32>
    %28 = math.log %27 : vector<4x128xf32>
    %cst_15 = arith.constant dense<0xFF800000> : vector<128xf32>
    %29 = vector.multi_reduction <maximumf>, %17, %cst_15 [0] : vector<4x128xf32> to vector<128xf32>
    %30 = vector.shape_cast %29 : vector<128xf32> to vector<1x128xf32>
    %31 = vector.broadcast %30 : vector<1x128xf32> to vector<4x128xf32>
    %32 = arith.subf %17, %31 : vector<4x128xf32>
    %33 = math.exp %32 : vector<4x128xf32>
    %cst_16 = arith.constant dense<0.000000e+00> : vector<128xf32>
    %34 = vector.multi_reduction <add>, %33, %cst_16 [0] : vector<4x128xf32> to vector<128xf32>
    %35 = vector.shape_cast %34 : vector<128xf32> to vector<1x128xf32>
    %36 = vector.broadcast %30 : vector<1x128xf32> to vector<4x128xf32>
    %37 = arith.subf %17, %36 : vector<4x128xf32>
    %38 = math.log %35 : vector<1x128xf32>
    %39 = vector.broadcast %38 : vector<1x128xf32> to vector<4x128xf32>
    %40 = arith.subf %37, %39 : vector<4x128xf32>
    %41 = vector.broadcast %35 : vector<1x128xf32> to vector<4x128xf32>
    %42 = arith.divf %33, %41 : vector<4x128xf32>
    %43 = vector.broadcast %3 : vector<1x128xf32> to vector<4x128xf32>
    %44 = arith.subf %43, %18 : vector<4x128xf32>
    %45 = arith.divf %44, %27 : vector<4x128xf32>
    %46 = vector.broadcast %3 : vector<1x128xf32> to vector<4x128xf32>
    %47 = arith.subf %40, %46 : vector<4x128xf32>
    %48 = arith.subf %47, %28 : vector<4x128xf32>
    %cst_17 = arith.constant 0.918938517 : f32
    %49 = vector.broadcast %cst_17 : f32 to vector<4x128xf32>
    %50 = arith.subf %48, %49 : vector<4x128xf32>
    %cst_18 = arith.constant 5.000000e-01 : f32
    %51 = vector.broadcast %cst_18 : f32 to vector<4x128xf32>
    %52 = arith.mulf %51, %45 : vector<4x128xf32>
    %53 = arith.mulf %52, %45 : vector<4x128xf32>
    %54 = arith.subf %50, %53 : vector<4x128xf32>
    %cst_19 = arith.constant dense<0xFF800000> : vector<128xf32>
    %55 = vector.multi_reduction <maximumf>, %54, %cst_19 [0] : vector<4x128xf32> to vector<128xf32>
    %56 = vector.shape_cast %55 : vector<128xf32> to vector<1x128xf32>
    %57 = vector.broadcast %56 : vector<1x128xf32> to vector<4x128xf32>
    %58 = arith.subf %54, %57 : vector<4x128xf32>
    %59 = math.exp %58 : vector<4x128xf32>
    %cst_20 = arith.constant dense<0.000000e+00> : vector<128xf32>
    %60 = vector.multi_reduction <add>, %59, %cst_20 [0] : vector<4x128xf32> to vector<128xf32>
    %61 = vector.shape_cast %60 : vector<128xf32> to vector<1x128xf32>
    %62 = math.log %61 : vector<1x128xf32>
    %63 = arith.addf %56, %62 : vector<1x128xf32>
    %cst_21 = arith.constant 0.707106769 : f32
    %64 = vector.broadcast %cst_21 : f32 to vector<4x128xf32>
    %65 = arith.mulf %45, %64 : vector<4x128xf32>
    %66 = math.erf %65 : vector<4x128xf32>
    %cst_22 = arith.constant 1.000000e+00 : f32
    %67 = vector.broadcast %cst_22 : f32 to vector<4x128xf32>
    %68 = arith.addf %67, %66 : vector<4x128xf32>
    %cst_23 = arith.constant 5.000000e-01 : f32
    %69 = vector.broadcast %cst_23 : f32 to vector<4x128xf32>
    %70 = arith.mulf %69, %68 : vector<4x128xf32>
    %cst_24 = arith.constant 1.000000e-07 : f32
    %cst_25 = arith.constant 0.99999988 : f32
    %71 = vector.broadcast %cst_24 : f32 to vector<4x128xf32>
    %72 = arith.maximumf %71, %70 : vector<4x128xf32>
    %73 = vector.broadcast %cst_25 : f32 to vector<4x128xf32>
    %74 = arith.minimumf %73, %72 : vector<4x128xf32>
    %cst_26 = arith.constant 1.000000e+00 : f32
    %75 = vector.broadcast %cst_26 : f32 to vector<4x128xf32>
    %76 = arith.subf %75, %74 : vector<4x128xf32>
    %77 = arith.mulf %42, %76 : vector<4x128xf32>
    %cst_27 = arith.constant dense<0.000000e+00> : vector<128xf32>
    %78 = vector.multi_reduction <add>, %77, %cst_27 [0] : vector<4x128xf32> to vector<128xf32>
    %79 = vector.shape_cast %78 : vector<128xf32> to vector<1x128xf32>
    %80 = math.log %79 : vector<1x128xf32>
    %cst_28 = arith.constant 5.000000e-01 : f32
    %81 = vector.broadcast %cst_28 : f32 to vector<4x128xf32>
    %82 = arith.mulf %81, %27 : vector<4x128xf32>
    %83 = arith.mulf %82, %27 : vector<4x128xf32>
    %84 = arith.addf %18, %83 : vector<4x128xf32>
    %85 = math.exp %84 : vector<4x128xf32>
    %86 = arith.mulf %42, %85 : vector<4x128xf32>
    %cst_29 = arith.constant dense<0.000000e+00> : vector<128xf32>
    %87 = vector.multi_reduction <add>, %86, %cst_29 [0] : vector<4x128xf32> to vector<128xf32>
    %88 = vector.shape_cast %87 : vector<128xf32> to vector<1x128xf32>
    %cst_30 = arith.constant 9.99999996E-13 : f32
    %89 = vector.broadcast %cst_30 : f32 to vector<1x128xf32>
    %90 = arith.subf %88, %89 : vector<1x128xf32>
    %c0_31 = arith.constant 0 : index
    %c0_32 = arith.constant 0 : index
    %91 = vector.load %arg7[%c0_31, %c0_32] : memref<12x128xf32, #tpu.memory_space<vmem>>, vector<4x128xf32>
    tpu.vector_store %arg7[%c0_31, %c0_32], %40 {strides = array<i32>} : memref<12x128xf32, #tpu.memory_space<vmem>>, vector<4x128xf32>,
    %c4 = arith.constant 4 : index
    %c0_33 = arith.constant 0 : index
    %92 = vector.load %arg7[%c4, %c0_33] : memref<12x128xf32, #tpu.memory_space<vmem>>, vector<4x128xf32>
    tpu.vector_store %arg7[%c4, %c0_33], %18 {strides = array<i32>} : memref<12x128xf32, #tpu.memory_space<vmem>>, vector<4x128xf32>,
    %c8 = arith.constant 8 : index
    %c0_34 = arith.constant 0 : index
    %93 = vector.load %arg7[%c8, %c0_34] : memref<12x128xf32, #tpu.memory_space<vmem>>, vector<4x128xf32>
    tpu.vector_store %arg7[%c8, %c0_34], %27 {strides = array<i32>} : memref<12x128xf32, #tpu.memory_space<vmem>>, vector<4x128xf32>,
    %c0_35 = arith.constant 0 : index
    %c0_36 = arith.constant 0 : index
    %94 = vector.load %arg8[%c0_35, %c0_36] : memref<3x128xf32, #tpu.memory_space<vmem>>, vector<1x128xf32>
    tpu.vector_store %arg8[%c0_35, %c0_36], %63 {strides = array<i32>} : memref<3x128xf32, #tpu.memory_space<vmem>>, vector<1x128xf32>,
    %c1 = arith.constant 1 : index
    %c0_37 = arith.constant 0 : index
    %95 = vector.load %arg8[%c1, %c0_37] : memref<3x128xf32, #tpu.memory_space<vmem>>, vector<1x128xf32>
    tpu.vector_store %arg8[%c1, %c0_37], %80 {strides = array<i32>} : memref<3x128xf32, #tpu.memory_space<vmem>>, vector<1x128xf32>,
    %c2 = arith.constant 2 : index
    %c0_38 = arith.constant 0 : index
    %96 = vector.load %arg8[%c2, %c0_38] : memref<3x128xf32, #tpu.memory_space<vmem>>, vector<1x128xf32>
    tpu.vector_store %arg8[%c2, %c0_38], %90 {strides = array<i32>} : memref<3x128xf32, #tpu.memory_space<vmem>>, vector<1x128xf32>,
    return
  }
  func.func @transform_0(%arg0: i32) -> (i32, i32) {
    %c0_i32 = arith.constant 0 : i32
    %c0_i32_0 = arith.constant 0 : i32
    return %c0_i32, %arg0 : i32, i32
  }
  func.func @transform_1(%arg0: i32) -> (i32, i32) {
    %c0_i32 = arith.constant 0 : i32
    %c0_i32_0 = arith.constant 0 : i32
    return %c0_i32, %arg0 : i32, i32
  }
  func.func @transform_2(%arg0: i32) -> (i32, i32) {
    %c0_i32 = arith.constant 0 : i32
    %c0_i32_0 = arith.constant 0 : i32
    %c0_i32_1 = arith.constant 0 : i32
    return %c0_i32, %c0_i32_0 : i32, i32
  }
  func.func @transform_3(%arg0: i32) -> (i32, i32) {
    %c0_i32 = arith.constant 0 : i32
    %c0_i32_0 = arith.constant 0 : i32
    %c0_i32_1 = arith.constant 0 : i32
    return %c0_i32, %c0_i32_0 : i32, i32
  }
  func.func @transform_4(%arg0: i32) -> (i32, i32) {
    %c0_i32 = arith.constant 0 : i32
    %c0_i32_0 = arith.constant 0 : i32
    %c0_i32_1 = arith.constant 0 : i32
    return %c0_i32, %c0_i32_0 : i32, i32
  }
  func.func @transform_5(%arg0: i32) -> (i32, i32) {
    %c0_i32 = arith.constant 0 : i32
    %c0_i32_0 = arith.constant 0 : i32
    %c0_i32_1 = arith.constant 0 : i32
    return %c0_i32, %c0_i32_0 : i32, i32
  }
  func.func @transform_6(%arg0: i32) -> (i32, i32) {
    %c0_i32 = arith.constant 0 : i32
    %c0_i32_0 = arith.constant 0 : i32
    return %c0_i32, %arg0 : i32, i32
  }
  func.func @transform_7(%arg0: i32) -> (i32, i32) {
    %c0_i32 = arith.constant 0 : i32
    %c0_i32_0 = arith.constant 0 : i32
    return %c0_i32, %arg0 : i32, i32
  }
}

</mosaic_0001>

<bundles_post_ra>
// kernel: tpu_custom_call.1
= control target key start
LH: loop header
LB: loop body
LE: loop exit
PB: predicated region body
PF: predicated region fallthrough
CT: control target
= control target key end

     0   :  { %13 = vsyncpa [#allocation3], 0  ;;  %vm86_vm0 = vcmask 261120   ;;  %v497_v3 = vmov 0   ;;  %s624_s0 = inlined_call_operand.vmem [shape: bf16[32,128], index: 0, kind: input, shape index: {}]   ;;  %s625_s1 = inlined_call_operand.vmem [shape: f32[1,128], index: 1, kind: input, shape index: {}]   ;;  %s626_s2 = inlined_call_operand.vmem [shape: bf16[32,32], index: 2, kind: input, shape index: {}]   ;;  %s627_s3 = inlined_call_operand.vmem [shape: f32[32,1], index: 3, kind: input, shape index: {}]   ;;  %s628_s4 = inlined_call_operand.vmem [shape: bf16[12,32], index: 4, kind: input, shape index: {}]   ;;  %s629_s5 = inlined_call_operand.vmem [shape: f32[12,1], index: 5, kind: input, shape index: {}]   ;;  %s630_s6 = inlined_call_operand.hbm [shape: f32[12,128], index: 6, kind: output, shape index: {0}]   ;;  %s631_s7 = inlined_call_operand.hbm [shape: f32[3,128], index: 7, kind: output, shape index: {1}]  }
   0x1   :  { %v410_v0 = vld [vmem:[%s624_s0] sm:$0xff]   ;;  %v411_v1 = vld [vmem:[%s624_s0 + $0x8] sm:$0xff]   ;;  %408 = vset.pattern.permute.xlu0 %v497_v3  ;;  %409 = vset.pattern.permute.xlu1 %v497_v3  ;;  %v42_v5 = vld [vmem:[%s627_s3 + $0x10] sm:$0xff] }
   0x2   :  { %385 = vmatprep.subr.bf16.mxu0 %v410_v0  ;;  %v412_v2 = vld [vmem:[%s626_s2] sm:$0xff]   ;;  %v413_v6 = vld [vmem:[%s626_s2 + $0x8] sm:$0xff]   ;;  %56 = vperm.xlu1 %409, %v42_v5   ;;  %v43_v8 = vld [vmem:[%s627_s3 + $0x18] sm:$0xff] }
   0x3   :  { %386 = vmatpush3.bf16.msra.mxu0 %v410_v0  ;;  %389 = vmatprep.mubr.msk.bf16.mxu0 %vm86_vm0, %v412_v2  ;;  %v40_v4 = vld [vmem:[%s627_s3] sm:$0xff]  ;;  %v41_v7 = vld [vmem:[%s627_s3 + $0x8] sm:$0xff] }
   0x4   :  { %387 = vmatprep.subr.bf16.mxu0 %v411_v1  ;;  %46 = vperm.xlu0 %408, %v40_v4  }
   0x5   :  { %14 = vsyncpa [#allocation5], 0  ;;  %v150_v9 = vld [vmem:[%s629_s5] sm:$0xff]  ;;  %v151_v10 = vld [vmem:[%s629_s5 + $0x8] sm:$0xf]  ;;  %v498_v11 = vmov 0.0   ;;  %v252_v63 = vlaneseq }
   0x6   :  { %61 = vperm.xlu1 %409, %v43_v8   ;;  %393 = vmatprep.subr.bf16.mxu1 %v498_v11  ;;  %vm499_vm1 = vmmov 0   ;;  %v414_v30 = vld [vmem:[%s628_s4] sm:$0x3f]   ;;  %vm228_vm2 = vcmask 1043456  }
   0x7   :  { %388 = vmatpush3.bf16.msra.mxu0 %v411_v1  ;;  %397 = vmatprep.mubr.msk.bf16.mxu1 %vm499_vm1, %v498_v11  ;;  %v28_v53 = vld [vmem:[%s625_s1] sm:$0x1]  ;;  %s500_s1 = smov [#allocation2]  }
   0x8   :  { %51 = vperm.xlu0 %408, %v41_v7   ;;  %v29_v54 = vadd.f32 1e-12, %v28_v53  ;;  %v253_v7 = vshrl.u32 %v252_v63, 7  ;;  %s343_s20 = sshll.u32 %s500_s1, 4  ;;  %s344_s20 = int_to_ptr.vmem [resolvable:$true] %s343_s20 }
   0x9   :  { %s449_s21 = scalar_lea.vmem %s344_s20, 256  ;;  %p454_p1 = scmp.lt.s32.totalorder %s344_s20, %s344_s20 }
   0xa   :  { %390 = vmatmul.mubr.msk.bf16.vlgmr.msra.gmra.mrb[0].mxu0 %vm86_vm0, %v413_v6  ;;  %159 = vperm.xlu1 %409, %v151_v10   ;;  %p450_p0 = scmp.ne.s32.totalorder %s344_s20, %s449_s21  ;;  %p455_p2 = scmp.lt.s32.totalorder %s449_s21, %s449_s21 }
   0xc   :  { %154 = vperm.xlu0 %408, %v150_v9   ;;  %p456_p3 = por %p455_p2, %p454_p1 }
   0xe   :  { %p457_p4 = pnand %p456_p3, %p450_p0 }
  0x81   :  { %v57_v12 = vpop.permute.xlu1 %56 }
  0x83   :  { %v47_v13 = vpop.permute.xlu0 %46 }
  0x85   :  { %v62_v17 = vpop.permute.xlu1 %61 }
  0x87   :  { %v52_v20 = vpop.permute.xlu0 %51 }
  0x89   :  { %v160_v35 = vpop.permute.xlu1 %159 }
  0x8b   :  { %v155_v31 = vpop.permute.xlu0 %154 }
  0xdd   :  { %v391_v14 = vpop.f32.mrb[0].mxu0 }
  0xde   :  { %v136_v15 = vadd.f32 %v391_v14, %v57_v12  ;;  %v127_v16 = vpop.f32.mrb[1].mxu0 }
  0xdf   :  { %v128_v18 = vadd.f32 %v127_v16, %v47_v13  ;;  %v392_v19 = vpop.f32.mrb[2].mxu0 }
  0xe0   :  { %415 = vtanh.f32 %v136_v15  ;;  %v139_v21 = vadd.f32 %v392_v19, %v62_v17  ;;  %v130_v22 = vpop.f32.mrb[3].mxu0  ;;  %v254_v15 = vsub.s32 0, %v253_v7 }
  0xe1   :  { %417 = vtanh.f32 %v128_v18  ;;  %v131_v23 = vadd.f32 %v130_v22, %v52_v20 }
  0xe2   :  { %419 = vtanh.f32 %v139_v21 }
  0xe3   :  { %421 = vtanh.f32 %v131_v23 }
  0xea   :  { %v416_v24 = vpop.eup %415 }
  0xeb   :  { %v418_v25 = vpop.eup %417 }
  0xec   :  { %v420_v26 = vpop.eup %419 }
  0xed   :  { %v422_v27 = vpop.eup %421  ;;  %v149_v28 = vpack.c.bf16 %v420_v26, %v416_v24 }
  0xee   :  { %v148_v29 = vpack.c.bf16 %v422_v27, %v418_v25 }
  0xf0   :  { %394 = vmatpush3.bf16.msra.mxu1 %v148_v29 }
  0xf1   :  { %395 = vmatprep.subr.bf16.mxu1 %v498_v11 }
  0xf4   :  { %396 = vmatpush3.bf16.msra.mxu1 %v149_v28 }
  0xf7   :  { %398 = vmatmul.mubr.msk.bf16.vlgmr.msra.gmra.mrb[0].mxu1 %vm86_vm0, %v414_v30 }
 0x1ca   :  { %v204_v32 = vpop.f32.mrb[0].mxu1 }
 0x1cb   :  { %v580_v33 = vadd.f32 %v204_v32, %v155_v31  ;;  %v399_v34 = vpop.f32.mrb[1].mxu1 }
 0x1cc   :  { %v207_v36 = vpop.f32.mrb[2].mxu1 }
 0x1cd   :  { %v229_v37 = vsel %vm228_vm2, %v580_v33, -inf  ;;  %333 = vst [vmem:[#allocation2] sm:$0xf0] %v580_v33  ;;  %v208_v38 = vadd.f32 %v207_v36, %v160_v35  ;;  %v400_v39 = vpop.f32.mrb[3].mxu1 }
 0x1ce   :  { %v230_v40 = vrot.slane %v229_v37, 4 }
 0x1cf   :  { %v212_v41 = vand.u32 2147483647, %v208_v38  ;;  %v211_v2 = vmax.f32 %v208_v38, 0.0 }
 0x1d0   :  { %v231_v42 = vmax.f32 %v229_v37, %v230_v40 }
 0x1d1   :  { %v213_v43 = vsub.f32 0.0, %v212_v41 }
 0x1d2   :  { %v232_v44 = vrot.slane %v231_v42, 2 }
 0x1d3   :  { %v214_v45 = vmul.f32 1.442695, %v213_v43 }
 0x1d4   :  { %v233_v46 = vmax.f32 %v231_v42, %v232_v44 }
 0x1d5   :  { %423 = vpow2.f32 %v214_v45 }
 0x1d6   :  { %v234_v47 = vrot.slane %v233_v46, 1 }
 0x1d8   :  { %v235_v48 = vmax.f32 %v233_v46, %v234_v47 }
 0x1da   :  { %v236_v49 = vsub.f32 %v580_v33, %v235_v48 }
 0x1dc   :  { %v237_v50 = vmul.f32 1.442695, %v236_v49 }
 0x1de   :  { %425 = vpow2.f32 %v237_v50 }
 0x1df   :  { %v424_v51 = vpop.eup %423 }
 0x1e0   :  { %v216_v52 = vadd.f32 1.0, %v424_v51  ;;  %v219_v55 = vmul.f32 -0.5, %v424_v51  ;;  %v222_v59 = vand.u32 2147483647, %v424_v51 }
 0x1e2   :  { %427 = vlog2.f32 %v216_v52  ;;  %v220_v57 = vadd.f32 1.0, %v219_v55  ;;  %vm223_vm3 = vcmp.lt.f32.partialorder %v222_v59, 0.0004427343 }
 0x1e3   :  { %429 = vlog2.f32 %v29_v54 }
 0x1e4   :  { %v221_v1 = vmul.f32 %v424_v51, %v220_v57 }
 0x1e8   :  { %v589_v56 = vpop.eup %425 }
 0x1e9   :  { %v239_v58 = vsel %vm228_vm2, %v589_v56, 0.0 }
 0x1ea   :  { %v240_v60 = vrot.slane %v239_v58, 4 }
 0x1ec   :  { %v428_v61 = vpop.eup %427  ;;  %v241_v62 = vadd.f32 %v240_v60, %v239_v58 }
 0x1ed   :  { %v218_v0 = vmul.f32 0.6931472, %v428_v61  ;;  %v430_v8 = vpop.eup %429 }
 0x1ee   :  { %v242_v3 = vrot.slane %v241_v62, 2  ;;  %v31_v14 = vmul.f32 0.6931472, %v430_v8 }
 0x1ef   :  { %v224_v4 = vsel %vm223_vm3, %v221_v1, %v218_v0 }
 0x1f0   :  { %v225_v5 = vadd.f32 %v224_v4, %v211_v2  ;;  %v243_v6 = vadd.f32 %v242_v3, %v241_v62  ;;  %v255_v18 = vrot.slane %v31_v14, %v254_v15 }
 0x1f2   :  { %v259_v9 = vrot.slane %v225_v5, 4  ;;  %v312_v10 = vmul.f32 0.5, %v225_v5  ;;  %334 = vst [vmem:[#allocation2 + $0x8] sm:$0xf] %v225_v5  ;;  %v244_v11 = vrot.slane %v243_v6, 1  ;;  %v257_v20 = vsub.f32 %v255_v18, %v580_v33 }
 0x1f4   :  { %431 = vrcp.f32 %v259_v9  ;;  %v313_v12 = vmul.f32 %v312_v10, %v225_v5  ;;  %v245_v13 = vadd.f32 %v244_v11, %v243_v6 }
 0x1f6   :  { %v315_v16 = vrot.slane %v313_v12, 4  ;;  %433 = vlog2.f32 %v245_v13 }
 0x1f7   :  { %435 = vlog2.f32 %v225_v5 }
 0x1f8   :  { %v317_v17 = vadd.f32 %v315_v16, %v580_v33  ;;  %437 = vrcp.f32 %v245_v13 }
 0x1fa   :  { %v318_v19 = vmul.f32 1.442695, %v317_v17 }
 0x1fc   :  { %439 = vpow2.f32 %v318_v19 }
 0x1fe   :  { %v432_v21 = vpop.eup %431 }
 0x1ff   :  { %v262_v22 = vmul.f32 %v432_v21, %v257_v20 }
 0x200   :  { %v434_v23 = vpop.eup %433 }
 0x201   :  { %v247_v24 = vmul.f32 0.6931472, %v434_v23  ;;  %v266_v25 = vmul.f32 0.5, %v262_v22  ;;  %v292_v26 = vmul.f32 0.70710677, %v262_v22  ;;  %v436_v27 = vpop.eup %435 }
 0x202   :  { %v438_v29 = vpop.eup %437  ;;  %v227_v30 = vmul.f32 0.6931472, %v436_v27 }
 0x203   :  { %v248_v28 = vsub.f32 %v236_v49, %v247_v24  ;;  %441 = verf.f32 %v292_v26  ;;  %v267_v32 = vmul.f32 %v266_v25, %v262_v22 }
 0x205   :  { %v263_v31 = vsub.f32 %v248_v28, %v255_v18  ;;  %332 = vst [vmem:[#allocation2] sm:$0xf] %v248_v28 }
 0x206   :  { %v440_v34 = vpop.eup %439 }
 0x207   :  { %460 = shalt.err (!%p457_p4)
}
 0x208   :  { %s461_s24 = scalar_lea.hbm %s630_s6, 256 }
 0x209   :  { %p462_p5 = scmp.ne.s32.totalorder %s630_s6, %s461_s24  ;;  %p465_p6 = scmp.lt.u32.totalorder %s461_s24, %s630_s6 }
 0x20b   :  { %p467_p7 = pnand %p465_p6, %p462_p5 }
 0x20d   :  { %470 = shalt.err (!%p467_p7)
}
 0x20e   :  { %s501_s29 = smov 128   ;;  %s502_s30 = smov 8   ;;  %v264_v33 = vsub.f32 %v263_v31, %v227_v30  ;;  %v250_v35 = vmul.f32 %v438_v29, %v589_v56  ;;  %v321_v36 = vrot.slane %v440_v34, 4  ;;  %v269_v38 = vrot.slane %v267_v32, 4  ;;  %v442_v43 = vpop.eup %441 }
 0x20f   :  { %349 = dma.vmem_to_hbm [thread:$0]  %s344_s20, 256, %s630_s6, [#allocation3], %s501_s29, %s501_s29, %s502_s30   ;;  %v294_v46 = vadd.f32 1.0, %v442_v43 }
 0x210   :  { %v376_v37 = vadd.f32 -0.9189385, %v264_v33  ;;  %v323_v39 = vmul.f32 %v321_v36, %v250_v35  ;;  %s503_s6 = smov [#allocation4]  }
 0x211   :  { %v295_v49 = vmul.f32 0.5, %v294_v46  ;;  %s356_s10 = sshll.u32 %s503_s6, 4  ;;  %s357_s10 = int_to_ptr.vmem [resolvable:$true] %s356_s10 }
 0x212   :  { %v271_v40 = vsub.f32 %v376_v37, %v269_v38  ;;  %v324_v41 = vsel %vm228_vm2, %v323_v39, 0.0  ;;  %s471_s0 = scalar_lea.vmem %s357_s10, 64  ;;  %p476_p9 = scmp.lt.s32.totalorder %s357_s10, %s357_s10 }
 0x213   :  { %v325_v42 = vrot.slane %v324_v41, 4  ;;  %v296_v52 = vmax.f32 %v295_v49, 1e-07  ;;  %p472_p8 = scmp.ne.s32.totalorder %s357_s10, %s471_s0  ;;  %p477_p10 = scmp.lt.s32.totalorder %s471_s0, %s471_s0 }
 0x214   :  { %v272_v44 = vsel %vm228_vm2, %v271_v40, -inf }
 0x215   :  { %v273_v45 = vrot.slane %v272_v44, 4  ;;  %v326_v47 = vadd.f32 %v325_v42, %v324_v41  ;;  %v297_v55 = vmin.f32 %v296_v52, 0.9999999  ;;  %p478_p11 = por %p477_p10, %p476_p9 }
 0x217   :  { %v274_v48 = vmax.f32 %v272_v44, %v273_v45  ;;  %v327_v50 = vrot.slane %v326_v47, 2  ;;  %v298_v58 = vsub.f32 1.0, %v297_v55  ;;  %p479_p12 = pnand %p478_p11, %p472_p8 }
 0x219   :  { %v275_v51 = vrot.slane %v274_v48, 2  ;;  %v328_v53 = vadd.f32 %v327_v50, %v326_v47  ;;  %v300_v61 = vrot.slane %v298_v58, 4 }
 0x21b   :  { %v276_v54 = vmax.f32 %v274_v48, %v275_v51  ;;  %v329_v56 = vrot.slane %v328_v53, 1  ;;  %v302_v0 = vmul.f32 %v300_v61, %v250_v35 }
 0x21d   :  { %v277_v57 = vrot.slane %v276_v54, 1  ;;  %v330_v59 = vadd.f32 %v329_v56, %v328_v53  ;;  %v303_v2 = vsel %vm228_vm2, %v302_v0, 0.0 }
 0x21e   :  { %v304_v3 = vrot.slane %v303_v2, 4 }
 0x21f   :  { %v278_v60 = vmax.f32 %v276_v54, %v277_v57  ;;  %v377_v62 = vadd.f32 -1e-12, %v330_v59 }
 0x220   :  { %v305_v4 = vadd.f32 %v304_v3, %v303_v2 }
 0x221   :  { %v279_v63 = vsub.f32 %v271_v40, %v278_v60  ;;  %337 = vst [vmem:[#allocation4 + $0x2] sm:$0x1] %v377_v62 }
 0x222   :  { %v306_v5 = vrot.slane %v305_v4, 2 }
 0x223   :  { %v280_v1 = vmul.f32 1.442695, %v279_v63 }
 0x224   :  { %v307_v6 = vadd.f32 %v306_v5, %v305_v4 }
 0x225   :  { %443 = vpow2.f32 %v280_v1 }
 0x226   :  { %v308_v7 = vrot.slane %v307_v6, 1 }
 0x228   :  { %v309_v8 = vadd.f32 %v308_v7, %v307_v6 }
 0x22a   :  { %445 = vlog2.f32 %v309_v8 }
 0x22f   :  { %v444_v9 = vpop.eup %443 }
 0x230   :  { %v282_v10 = vsel %vm228_vm2, %v444_v9, 0.0 }
 0x231   :  { %v283_v11 = vrot.slane %v282_v10, 4 }
 0x233   :  { %v284_v12 = vadd.f32 %v283_v11, %v282_v10 }
 0x234   :  { %v446_v16 = vpop.eup %445 }
 0x235   :  { %v285_v13 = vrot.slane %v284_v12, 2  ;;  %v311_v18 = vmul.f32 0.6931472, %v446_v16 }
 0x237   :  { %v286_v14 = vadd.f32 %v285_v13, %v284_v12  ;;  %336 = vst [vmem:[#allocation4 + $0x1] sm:$0x1] %v311_v18 }
 0x239   :  { %v287_v15 = vrot.slane %v286_v14, 1 }
 0x23b   :  { %v288_v17 = vadd.f32 %v287_v15, %v286_v14 }
 0x23d   :  { %447 = vlog2.f32 %v288_v17 }
 0x247   :  { %v448_v19 = vpop.eup %447 }
 0x248   :  { %v290_v20 = vmul.f32 0.6931472, %v448_v19 }
 0x24a   :  { %v291_v21 = vadd.f32 %v290_v20, %v278_v60 }
 0x24c   :  { %335 = vst [vmem:[#allocation4] sm:$0x1] %v291_v21 }
 0x24d   :  { %482 = shalt.err (!%p479_p12)
}
 0x24e   :  { %s483_s13 = scalar_lea.hbm %s631_s7, 64 }
 0x24f   :  { %p484_p13 = scmp.ne.s32.totalorder %s631_s7, %s483_s13  ;;  %p487_p0 = scmp.lt.u32.totalorder %s483_s13, %s631_s7 }
 0x251   :  { %p489_p1 = pnand %p487_p0, %p484_p13 }
 0x253   :  { %492 = shalt.err (!%p489_p1)
}
 0x254   :  { %359 = dma.vmem_to_hbm [thread:$0]  %s357_s10, 64, %s631_s7, [#allocation5]  }
 0x255   :  { %493 = dma.done.wait [#allocation3], 256  }
 0x256   :  { %494 = vsyncadd [#allocation3], 4294967040 }
 0x257   :  { %495 = dma.done.wait [#allocation5], 64  }
 0x258   :  { %496 = vsyncadd [#allocation5], 4294967232 }
 0x259   :  { %366 = vsyncpa [#allocation3], 1 }
 0x25a   :  { %367 = vsyncpa [#allocation5], 1 }

</bundles_post_ra>
